<compile_context>
chip_gen: v6e
topology: v6e:2x2x1
jax: 0.10.0
libtpu: 0.0.40
codegen_flags: <defaults>
</compile_context>

<pallas_src>
import math

import jax
import jax.numpy as jnp
from jax.experimental import pallas as pl
from jax.experimental.pallas import tpu as pltpu


def _resmlp_sum_kernel(x_ref, win_ref, bin_ref, w1_ref, b1_ref,
                       w2_ref, b2_ref, wout_ref, bout_ref, o_ref):
    # x tile: (TM, Din)
    x = x_ref[...]

    # Input projection (no activation after it in the reference module).
    h = jnp.dot(x, win_ref[...], preferred_element_type=jnp.float32) + bin_ref[...]

    # Residual blocks. hidden == hidden => identity shortcut, so the shortcut
    # matmul is skipped entirely (residual is just h).
    num_blocks = w1_ref.shape[0]
    for i in range(num_blocks):            # static unroll, compile-time trip count
        residual = h
        t = jnp.maximum(
            jnp.dot(h, w1_ref[i], preferred_element_type=jnp.float32) + b1_ref[i],
            0.0)
        t = jnp.dot(t, w2_ref[i], preferred_element_type=jnp.float32) + b2_ref[i]
        h = jnp.maximum(t + residual, 0.0)

    # Output projection, stored directly into the output tile.
    out = jnp.dot(h, wout_ref[...], preferred_element_type=jnp.float32) + bout_ref[...]
    o_ref[...] = out.astype(o_ref.dtype)


def _pick_tile(batch, max_tile=512):
    """Largest batch tile <= max_tile that evenly divides batch (sublane-friendly)."""
    if batch <= max_tile:
        return batch
    for tm in (512, 256, 128, 64, 32, 16, 8):
        if tm <= max_tile and batch % tm == 0:
            return tm
    return batch   # fallback: single block


def resmlp_sum(x, params, *, max_tile=512):
    """x: (B, input_dim) float32. Returns (out, x_temp) like the PyTorch module."""
    B, Din = x.shape
    H = params["win"].shape[1]
    Dout = params["wout"].shape[1]
    NB = params["w1"].shape[0]

    tm = _pick_tile(B, max_tile)
    grid = (B // tm,)

    def resident(ndim):
        return lambda i: (0,) * ndim      # weights/biases stay VMEM-resident

    out = pl.pallas_call(
        _resmlp_sum_kernel,
        out_shape=jax.ShapeDtypeStruct((B, Dout), x.dtype),
        grid=grid,
        in_specs=[
            pl.BlockSpec((tm, Din), lambda i: (i, 0)),      # x tile
            pl.BlockSpec((Din, H), resident(2)),            # input weight
            pl.BlockSpec((1, H), resident(2)),              # input bias
            pl.BlockSpec((NB, H, H), resident(3)),          # fc1 weights (stacked)
            pl.BlockSpec((NB, 1, H), resident(3)),          # fc1 biases
            pl.BlockSpec((NB, H, H), resident(3)),          # fc2 weights
            pl.BlockSpec((NB, 1, H), resident(3)),          # fc2 biases
            pl.BlockSpec((H, Dout), resident(2)),           # output weight
            pl.BlockSpec((1, Dout), resident(2)),           # output bias
        ],
        out_specs=pl.BlockSpec((tm, Dout), lambda i: (i, 0)),
        compiler_params=pltpu.CompilerParams(
            dimension_semantics=("parallel",)),
    )(x, params["win"], params["bin"], params["w1"], params["b1"],
      params["w2"], params["b2"], params["wout"], params["bout"])

    # ResMLPSum.forward returns (out, x_temp) where x_temp is the same tensor.
    return out, out


def init_params(key, input_dim, hidden, output_dim, num_blocks):
    """Deterministic init mimicking nn.Linear's uniform(-1/sqrt(fan_in), ...)."""
    ks = jax.random.split(key, 4 + 4 * num_blocks)

    def lin(kw, kb, fan_in, fan_out):
        bound = 1.0 / math.sqrt(fan_in)
        w = jax.random.uniform(kw, (fan_out, fan_in), jnp.float32, -bound, bound)
        b = jax.random.uniform(kb, (fan_out,), jnp.float32, -bound, bound)
        return w.T, b.reshape(1, fan_out)   # pre-transposed: (fan_in, fan_out)

    win, bin_ = lin(ks[0], ks[1], input_dim, hidden)
    w1s, b1s, w2s, b2s = [], [], [], []
    for i in range(num_blocks):
        base = 2 + 4 * i
        w1, b1 = lin(ks[base + 0], ks[base + 1], hidden, hidden)
        w2, b2 = lin(ks[base + 2], ks[base + 3], hidden, hidden)
        w1s.append(w1); b1s.append(b1); w2s.append(w2); b2s.append(b2)
    wout, bout = lin(ks[-2], ks[-1], hidden, output_dim)

    return dict(win=win, bin=bin_, wout=wout, bout=bout,
                w1=jnp.stack(w1s), b1=jnp.stack(b1s),
                w2=jnp.stack(w2s), b2=jnp.stack(b2s))


def reference(x, p):
    h = x @ p["win"] + p["bin"]
    for i in range(p["w1"].shape[0]):
        residual = h
        t = jnp.maximum(h @ p["w1"][i] + p["b1"][i], 0.0)
        t = t @ p["w2"][i] + p["b2"][i]
        h = jnp.maximum(t + residual, 0.0)
    out = h @ p["wout"] + p["bout"]
    return out, out


if __name__ == "__main__":
    key = jax.random.PRNGKey(0)
    k_x, k_p = jax.random.split(key)

    batch, input_dim, hidden, output_dim, num_blocks = 16, 16, 32, 8, 2
    x = jax.random.normal(k_x, (batch, input_dim), dtype=jnp.float32)
    params = init_params(k_p, input_dim, hidden, output_dim, num_blocks)

    y, y_temp = resmlp_sum(x, params, max_tile=8)   # tm=8 -> grid=(2,) exercises tiling
    y = jax.block_until_ready(y)
    y_temp = jax.block_until_ready(y_temp)

    y_ref, _ = reference(x, params)
    assert y.shape == (batch, output_dim)
    assert y_temp.shape == (batch, output_dim)
    assert jnp.allclose(y, y_ref, atol=1e-5, rtol=1e-5)
    assert jnp.allclose(y_temp, y_ref, atol=1e-5, rtol=1e-5)

    print("KERNEL_OK")
</pallas_src>

<mosaic_0001>
module attributes {stable_mosaic.version = 11 : i64} {
  func.func @_resmlp_sum_kernel(%arg0: i32, %arg1: memref<8x16xf32, #tpu.memory_space<vmem>>, %arg2: memref<16x32xf32, #tpu.memory_space<vmem>>, %arg3: memref<1x32xf32, #tpu.memory_space<vmem>>, %arg4: memref<2x32x32xf32, #tpu.memory_space<vmem>>, %arg5: memref<2x1x32xf32, #tpu.memory_space<vmem>>, %arg6: memref<2x32x32xf32, #tpu.memory_space<vmem>>, %arg7: memref<2x1x32xf32, #tpu.memory_space<vmem>>, %arg8: memref<32x8xf32, #tpu.memory_space<vmem>>, %arg9: memref<1x8xf32, #tpu.memory_space<vmem>>, %arg10: memref<8x8xf32, #tpu.memory_space<vmem>>) attributes {dimension_semantics = [#tpu.dimension_semantics<parallel>], iteration_bounds = array<i64: 2>, scalar_prefetch = 0 : i64, scratch_operands = 0 : i64, tpu.core_type = #tpu.core_type<tc>, window_params = [{transform_indices = @transform_0, window_bounds = array<i64: 8, 16>}, {pipeline_mode = #tpu.pipeline_mode<synchronous>, transform_indices = @transform_1, window_bounds = array<i64: 16, 32>}, {pipeline_mode = #tpu.pipeline_mode<synchronous>, transform_indices = @transform_2, window_bounds = array<i64: 1, 32>}, {pipeline_mode = #tpu.pipeline_mode<synchronous>, transform_indices = @transform_3, window_bounds = array<i64: 2, 32, 32>}, {pipeline_mode = #tpu.pipeline_mode<synchronous>, transform_indices = @transform_4, window_bounds = array<i64: 2, 1, 32>}, {pipeline_mode = #tpu.pipeline_mode<synchronous>, transform_indices = @transform_5, window_bounds = array<i64: 2, 32, 32>}, {pipeline_mode = #tpu.pipeline_mode<synchronous>, transform_indices = @transform_6, window_bounds = array<i64: 2, 1, 32>}, {pipeline_mode = #tpu.pipeline_mode<synchronous>, transform_indices = @transform_7, window_bounds = array<i64: 32, 8>}, {pipeline_mode = #tpu.pipeline_mode<synchronous>, transform_indices = @transform_8, window_bounds = array<i64: 1, 8>}, {transform_indices = @transform_9, window_bounds = array<i64: 8, 8>}]} {
    %c0 = arith.constant 0 : index
    %c0_0 = arith.constant 0 : index
    %0 = vector.load %arg1[%c0, %c0_0] : memref<8x16xf32, #tpu.memory_space<vmem>>, vector<8x16xf32>
    %c0_1 = arith.constant 0 : index
    %c0_2 = arith.constant 0 : index
    %1 = vector.load %arg2[%c0_1, %c0_2] : memref<16x32xf32, #tpu.memory_space<vmem>>, vector<16x32xf32>
    %cst = arith.constant dense<0.000000e+00> : vector<8x32xf32>
    %2 = tpu.matmul %0, %1, %cst {dimension_numbers = #tpu.dot_dimension_numbers<[1], [0], [0], [1], [0, 0, 1, 1], [], []>} : vector<8x16xf32>, vector<16x32xf32>, vector<8x32xf32> -> vector<8x32xf32>
    %c0_3 = arith.constant 0 : index
    %c0_4 = arith.constant 0 : index
    %3 = vector.load %arg3[%c0_3, %c0_4] : memref<1x32xf32, #tpu.memory_space<vmem>>, vector<1x32xf32>
    %4 = vector.broadcast %3 : vector<1x32xf32> to vector<8x32xf32>
    %5 = arith.addf %2, %4 : vector<8x32xf32>
    %c0_5 = arith.constant 0 : index
    %c0_6 = arith.constant 0 : index
    %c0_7 = arith.constant 0 : index
    %6 = vector.load %arg4[%c0_5, %c0_6, %c0_7] : memref<2x32x32xf32, #tpu.memory_space<vmem>>, vector<1x32x32xf32>
    %7 = vector.shape_cast %6 : vector<1x32x32xf32> to vector<32x32xf32>
    %cst_8 = arith.constant dense<0.000000e+00> : vector<8x32xf32>
    %8 = tpu.matmul %5, %7, %cst_8 {dimension_numbers = #tpu.dot_dimension_numbers<[1], [0], [0], [1], [0, 0, 1, 1], [], []>} : vector<8x32xf32>, vector<32x32xf32>, vector<8x32xf32> -> vector<8x32xf32>
    %c0_9 = arith.constant 0 : index
    %c0_10 = arith.constant 0 : index
    %c0_11 = arith.constant 0 : index
    %9 = vector.load %arg5[%c0_9, %c0_10, %c0_11] : memref<2x1x32xf32, #tpu.memory_space<vmem>>, vector<1x1x32xf32>
    %10 = vector.shape_cast %9 : vector<1x1x32xf32> to vector<1x32xf32>
    %11 = vector.broadcast %10 : vector<1x32xf32> to vector<8x32xf32>
    %12 = arith.addf %8, %11 : vector<8x32xf32>
    %cst_12 = arith.constant 0.000000e+00 : f32
    %13 = vector.broadcast %cst_12 : f32 to vector<8x32xf32>
    %14 = arith.maximumf %12, %13 : vector<8x32xf32>
    %c0_13 = arith.constant 0 : index
    %c0_14 = arith.constant 0 : index
    %c0_15 = arith.constant 0 : index
    %15 = vector.load %arg6[%c0_13, %c0_14, %c0_15] : memref<2x32x32xf32, #tpu.memory_space<vmem>>, vector<1x32x32xf32>
    %16 = vector.shape_cast %15 : vector<1x32x32xf32> to vector<32x32xf32>
    %cst_16 = arith.constant dense<0.000000e+00> : vector<8x32xf32>
    %17 = tpu.matmul %14, %16, %cst_16 {dimension_numbers = #tpu.dot_dimension_numbers<[1], [0], [0], [1], [0, 0, 1, 1], [], []>} : vector<8x32xf32>, vector<32x32xf32>, vector<8x32xf32> -> vector<8x32xf32>
    %c0_17 = arith.constant 0 : index
    %c0_18 = arith.constant 0 : index
    %c0_19 = arith.constant 0 : index
    %18 = vector.load %arg7[%c0_17, %c0_18, %c0_19] : memref<2x1x32xf32, #tpu.memory_space<vmem>>, vector<1x1x32xf32>
    %19 = vector.shape_cast %18 : vector<1x1x32xf32> to vector<1x32xf32>
    %20 = vector.broadcast %19 : vector<1x32xf32> to vector<8x32xf32>
    %21 = arith.addf %17, %20 : vector<8x32xf32>
    %22 = arith.addf %21, %5 : vector<8x32xf32>
    %cst_20 = arith.constant 0.000000e+00 : f32
    %23 = vector.broadcast %cst_20 : f32 to vector<8x32xf32>
    %24 = arith.maximumf %22, %23 : vector<8x32xf32>
    %c1 = arith.constant 1 : index
    %c0_21 = arith.constant 0 : index
    %c0_22 = arith.constant 0 : index
    %25 = vector.load %arg4[%c1, %c0_21, %c0_22] : memref<2x32x32xf32, #tpu.memory_space<vmem>>, vector<1x32x32xf32>
    %26 = vector.shape_cast %25 : vector<1x32x32xf32> to vector<32x32xf32>
    %cst_23 = arith.constant dense<0.000000e+00> : vector<8x32xf32>
    %27 = tpu.matmul %24, %26, %cst_23 {dimension_numbers = #tpu.dot_dimension_numbers<[1], [0], [0], [1], [0, 0, 1, 1], [], []>} : vector<8x32xf32>, vector<32x32xf32>, vector<8x32xf32> -> vector<8x32xf32>
    %c1_24 = arith.constant 1 : index
    %c0_25 = arith.constant 0 : index
    %c0_26 = arith.constant 0 : index
    %28 = vector.load %arg5[%c1_24, %c0_25, %c0_26] : memref<2x1x32xf32, #tpu.memory_space<vmem>>, vector<1x1x32xf32>
    %29 = vector.shape_cast %28 : vector<1x1x32xf32> to vector<1x32xf32>
    %30 = vector.broadcast %29 : vector<1x32xf32> to vector<8x32xf32>
    %31 = arith.addf %27, %30 : vector<8x32xf32>
    %cst_27 = arith.constant 0.000000e+00 : f32
    %32 = vector.broadcast %cst_27 : f32 to vector<8x32xf32>
    %33 = arith.maximumf %31, %32 : vector<8x32xf32>
    %c1_28 = arith.constant 1 : index
    %c0_29 = arith.constant 0 : index
    %c0_30 = arith.constant 0 : index
    %34 = vector.load %arg6[%c1_28, %c0_29, %c0_30] : memref<2x32x32xf32, #tpu.memory_space<vmem>>, vector<1x32x32xf32>
    %35 = vector.shape_cast %34 : vector<1x32x32xf32> to vector<32x32xf32>
    %cst_31 = arith.constant dense<0.000000e+00> : vector<8x32xf32>
    %36 = tpu.matmul %33, %35, %cst_31 {dimension_numbers = #tpu.dot_dimension_numbers<[1], [0], [0], [1], [0, 0, 1, 1], [], []>} : vector<8x32xf32>, vector<32x32xf32>, vector<8x32xf32> -> vector<8x32xf32>
    %c1_32 = arith.constant 1 : index
    %c0_33 = arith.constant 0 : index
    %c0_34 = arith.constant 0 : index
    %37 = vector.load %arg7[%c1_32, %c0_33, %c0_34] : memref<2x1x32xf32, #tpu.memory_space<vmem>>, vector<1x1x32xf32>
    %38 = vector.shape_cast %37 : vector<1x1x32xf32> to vector<1x32xf32>
    %39 = vector.broadcast %38 : vector<1x32xf32> to vector<8x32xf32>
    %40 = arith.addf %36, %39 : vector<8x32xf32>
    %41 = arith.addf %40, %24 : vector<8x32xf32>
    %cst_35 = arith.constant 0.000000e+00 : f32
    %42 = vector.broadcast %cst_35 : f32 to vector<8x32xf32>
    %43 = arith.maximumf %41, %42 : vector<8x32xf32>
    %c0_36 = arith.constant 0 : index
    %c0_37 = arith.constant 0 : index
    %44 = vector.load %arg8[%c0_36, %c0_37] : memref<32x8xf32, #tpu.memory_space<vmem>>, vector<32x8xf32>
    %cst_38 = arith.constant dense<0.000000e+00> : vector<8x8xf32>
    %45 = tpu.matmul %43, %44, %cst_38 {dimension_numbers = #tpu.dot_dimension_numbers<[1], [0], [0], [1], [0, 0, 1, 1], [], []>} : vector<8x32xf32>, vector<32x8xf32>, vector<8x8xf32> -> vector<8x8xf32>
    %c0_39 = arith.constant 0 : index
    %c0_40 = arith.constant 0 : index
    %46 = vector.load %arg9[%c0_39, %c0_40] : memref<1x8xf32, #tpu.memory_space<vmem>>, vector<1x8xf32>
    %47 = vector.broadcast %46 : vector<1x8xf32> to vector<8x8xf32>
    %48 = arith.addf %45, %47 : vector<8x8xf32>
    %c0_41 = arith.constant 0 : index
    %c0_42 = arith.constant 0 : index
    %49 = vector.load %arg10[%c0_41, %c0_42] : memref<8x8xf32, #tpu.memory_space<vmem>>, vector<8x8xf32>
    tpu.vector_store %arg10[%c0_41, %c0_42], %48 {strides = array<i32>} : memref<8x8xf32, #tpu.memory_space<vmem>>, vector<8x8xf32>,
    return
  }
  func.func @transform_0(%arg0: i32) -> (i32, i32) {
    %c0_i32 = arith.constant 0 : i32
    %c0_i32_0 = arith.constant 0 : i32
    return %arg0, %c0_i32 : i32, i32
  }
  func.func @transform_1(%arg0: i32) -> (i32, i32) {
    %c0_i32 = arith.constant 0 : i32
    %c0_i32_0 = arith.constant 0 : i32
    %c0_i32_1 = arith.constant 0 : i32
    return %c0_i32, %c0_i32_0 : i32, i32
  }
  func.func @transform_2(%arg0: i32) -> (i32, i32) {
    %c0_i32 = arith.constant 0 : i32
    %c0_i32_0 = arith.constant 0 : i32
    %c0_i32_1 = arith.constant 0 : i32
    return %c0_i32, %c0_i32_0 : i32, i32
  }
  func.func @transform_3(%arg0: i32) -> (i32, i32, i32) {
    %c0_i32 = arith.constant 0 : i32
    %c0_i32_0 = arith.constant 0 : i32
    %c0_i32_1 = arith.constant 0 : i32
    %c0_i32_2 = arith.constant 0 : i32
    return %c0_i32, %c0_i32_0, %c0_i32_1 : i32, i32, i32
  }
  func.func @transform_4(%arg0: i32) -> (i32, i32, i32) {
    %c0_i32 = arith.constant 0 : i32
    %c0_i32_0 = arith.constant 0 : i32
    %c0_i32_1 = arith.constant 0 : i32
    %c0_i32_2 = arith.constant 0 : i32
    return %c0_i32, %c0_i32_0, %c0_i32_1 : i32, i32, i32
  }
  func.func @transform_5(%arg0: i32) -> (i32, i32, i32) {
    %c0_i32 = arith.constant 0 : i32
    %c0_i32_0 = arith.constant 0 : i32
    %c0_i32_1 = arith.constant 0 : i32
    %c0_i32_2 = arith.constant 0 : i32
    return %c0_i32, %c0_i32_0, %c0_i32_1 : i32, i32, i32
  }
  func.func @transform_6(%arg0: i32) -> (i32, i32, i32) {
    %c0_i32 = arith.constant 0 : i32
    %c0_i32_0 = arith.constant 0 : i32
    %c0_i32_1 = arith.constant 0 : i32
    %c0_i32_2 = arith.constant 0 : i32
    return %c0_i32, %c0_i32_0, %c0_i32_1 : i32, i32, i32
  }
  func.func @transform_7(%arg0: i32) -> (i32, i32) {
    %c0_i32 = arith.constant 0 : i32
    %c0_i32_0 = arith.constant 0 : i32
    %c0_i32_1 = arith.constant 0 : i32
    return %c0_i32, %c0_i32_0 : i32, i32
  }
  func.func @transform_8(%arg0: i32) -> (i32, i32) {
    %c0_i32 = arith.constant 0 : i32
    %c0_i32_0 = arith.constant 0 : i32
    %c0_i32_1 = arith.constant 0 : i32
    return %c0_i32, %c0_i32_0 : i32, i32
  }
  func.func @transform_9(%arg0: i32) -> (i32, i32) {
    %c0_i32 = arith.constant 0 : i32
    %c0_i32_0 = arith.constant 0 : i32
    return %arg0, %c0_i32 : i32, i32
  }
}

</mosaic_0001>

<bundles_post_ra>
// kernel: tpu_custom_call.1
= control target key start
LH: loop header
LB: loop body
LE: loop exit
PB: predicated region body
PF: predicated region fallthrough
CT: control target
= control target key end

     0   :  { %14 = vsyncpa [#allocation3], 0  ;;  %s1368_s0 = inlined_call_operand.vmem [shape: f32[16,16], index: 0, kind: input, shape index: {}]   ;;  %s1369_s1 = inlined_call_operand.vmem [shape: f32[16,32], index: 1, kind: input, shape index: {}]   ;;  %s1370_s2 = inlined_call_operand.vmem [shape: f32[1,32], index: 2, kind: input, shape index: {}]   ;;  %s1371_s3 = inlined_call_operand.hbm [shape: f32[2,32,32], index: 3, kind: input, shape index: {}]   ;;  %s1372_s4 = inlined_call_operand.vmem [shape: f32[2,1,32], index: 4, kind: input, shape index: {}]   ;;  %s1373_s5 = inlined_call_operand.hbm [shape: f32[2,32,32], index: 5, kind: input, shape index: {}]   ;;  %s1374_s6 = inlined_call_operand.vmem [shape: f32[2,1,32], index: 6, kind: input, shape index: {}]   ;;  %s1375_s7 = inlined_call_operand.vmem [shape: f32[32,8], index: 7, kind: input, shape index: {}]   ;;  %s1376_s8 = inlined_call_operand.vmem [shape: f32[1,8], index: 8, kind: input, shape index: {}]   ;;  %s1377_s9 = inlined_call_operand.vmem [shape: f32[16,8], index: 9, kind: output, shape index: {}]  }
   0x1   :  { %15 = vsyncpa [#allocation5], 0  ;;  %s1224_s30 = smov 0  }
   0x2 LB: > { %s1230_s10 = sadd.s32 4294967295, %s1166_s30   ;;  %p952_p0 = scmp.ge.s32.totalorder %s1166_s30, 1  ;;  %s1166_s30 = sphi %s1224_s30, %s21_s30  }
   0x3   : > { %p246_p1 = scmp.lt.s32.totalorder %s1166_s30, 3  ;;  %s1168_s11 = smov [#allocation2]  }
   0x4   : > { %s264_s12 = sshll.u32 %s1168_s11, 4  ;;  %p1082_p3 = scmp.eq.s32.totalorder %s1230_s10, 0  ;;  %s265_s12 = int_to_ptr.vmem [resolvable:$true] %s264_s12 }
   0x5   : > { %p1234_p2 = pnand %p952_p0, %p246_p1  ;;  %s1169_s14 = smov [#allocation4]  }
   0x6   : > { %s280_s15 = sshll.u32 %s1169_s14, 4  ;;  %s1111_s17 = scalar_lea.vmem %s265_s12, 1024  ;;  %s281_s15 = int_to_ptr.vmem [resolvable:$true] %s280_s15 }
   0x7   : > { %p1075_p4 = pneg %p1234_p2  ;;  %p1112_p7 = scmp.ne.s32.totalorder %s265_s12, %s1111_s17 }
   0x8   : > { %p1119_p10 = scmp.lt.s32.totalorder %s265_s12, %s265_s12  ;;  %p1120_p11 = scmp.lt.s32.totalorder %s1111_s17, %s1111_s17 }
   0x9   : > { %p1243_p5 = pnand %p1082_p3, %p1075_p4 }
   0xa   : > { %p1121_p12 = por %p1120_p11, %p1119_p10 }
   0xb   : > { %p1102_p6 = pneg %p1243_p5 }
   0xd   : > { %p1114_p8 = pnand %p1112_p7, %p1102_p6 }
   0xf   : > { %p1115_p9 = pneg %p1114_p8 }
  0x11   : > { %p1122_p13 = pnand %p1121_p12, %p1115_p9 }
  0x13   : > { %1125 = shalt.err (!%p1122_p13)
}
  0x14   : > { %s1170_s18 = smov 128   ;;  %s1171_s19 = smov 8  }
  0x15   : > { %1078 = dma.hbm_to_vmem [thread:$0]  (!%p1243_p5), %s1371_s3, 1024, %s265_s12, [#allocation3], %s1170_s18, %s1170_s18, %s1171_s19  }
  0x16   : > { %s1137_s22 = scalar_lea.vmem %s281_s15, 1024  ;;  %p1145_p7 = scmp.lt.s32.totalorder %s281_s15, %s281_s15 }
  0x17   : > { %p1138_p0 = scmp.ne.s32.totalorder %s281_s15, %s1137_s22  ;;  %p1146_p8 = scmp.lt.s32.totalorder %s1137_s22, %s1137_s22 }
  0x19   : > { %p1140_p1 = pnand %p1138_p0, %p1102_p6  ;;  %p1147_p10 = por %p1146_p8, %p1145_p7 }
  0x1b   : > { %p1141_p4 = pneg %p1140_p1 }
  0x1d   : > { %p1148_p9 = pnand %p1147_p10, %p1141_p4 }
  0x1f   : > { %1151 = shalt.err (!%p1148_p9)
}
  0x20   : > { %1081 = dma.hbm_to_vmem [thread:$0]  (!%p1243_p5), %s1373_s5, 1024, %s281_s15, [#allocation5], %s1170_s18, %s1170_s18, %s1171_s19  }
  0x21   : > { %312 = sbr.rel (%p1234_p2) target bundleno = 1230 (0x4ce), region = 56 }
  0x26   : > { %1157 = dma.done.wait (%p1082_p3), [#allocation3], 1024  }
  0x27   : > { %1159 = vsyncadd (%p1082_p3), [#allocation3], 4294966272 }
  0x28   : > { %1161 = dma.done.wait (%p1082_p3), [#allocation5], 1024  }
  0x29   : > { %1163 = vsyncadd (%p1082_p3), [#allocation5], 4294966272  ;;  %p350_p6 = scmp.lt.s32.totalorder %s1230_s10, 1  ;;  %v1172_v0 = vmov 0.0   ;;  %vm1173_vm0 = vmmov 0   ;;  %v360_v1 = vld [vmem:[%s1369_s1 + $0x8] sm:$0xff] }
  0x2a   : > { %1005 = vmatprep.subr.mxu0 %v1172_v0  ;;  %1009 = vmatprep.mubr.msk.f32.mxu0 %vm1173_vm0, %v1172_v0  ;;  %v359_v2 = vld [vmem:[%s1369_s1] sm:$0xff]  ;;  %vm368_vm1 = vcmask 130048   ;;  %v445_v4 = vld [vmem:[#allocation2 + $0x18] sm:$0xff]  ;;  %v444_v5 = vld [vmem:[#allocation2 + $0x10] sm:$0xff]  ;;  %vm453_vm2 = vcmask 261120   ;;  %vm873_vm3 = vcmask 64512  }
  0x2b   : > { %s1381_s10 = smov (!%p350_p6, %s1230_s10), 1  ;;  %1012 = vmatprep.subr.mxu1 %v1172_v0  ;;  %1020 = vmatprep.mubr.msk.f32.mxu1 %vm1173_vm0, %v1172_v0  ;;  %v443_v6 = vld [vmem:[#allocation2 + $0x8] sm:$0xff]  ;;  %v442_v7 = vld [vmem:[#allocation2] sm:$0xff]  ;;  %v531_v8 = vld [vmem:[#allocation4 + $0x18] sm:$0xff] }
  0x2c   : > { %s959_s25 = sshll.u32 %s1381_s10, 3  ;;  %1006 = vmatpush3.msra.mxu0 %v360_v1  ;;  %1013 = vmatpush3.msra.mxu1 %v445_v4  ;;  %v961_v9 = vld [vmem:[%s1370_s2] ss:$0 sm:$0xff]  ;;  %v530_v13 = vld [vmem:[#allocation4 + $0x10] sm:$0xff]  ;;  %v529_v14 = vld [vmem:[#allocation4 + $0x8] sm:$0xff] }
  0x2d   : > { %s353_s28 = scalar_lea.vmem %s1368_s0, %s959_s25  ;;  %1007 = vmatprep.subr.mxu0 %v1172_v0  ;;  %1014 = vmatprep.subr.mxu1 %v1172_v0  ;;  %v528_v15 = vld [vmem:[#allocation4] sm:$0xff]  ;;  %v618_v21 = vld [vmem:[#allocation2 + $0x38] sm:$0xff]  ;;  %v617_v22 = vld [vmem:[#allocation2 + $0x30] sm:$0xff]  ;;  %s357_s18 = scalar_lea.vmem %s1377_s9, %s959_s25 }
  0x2e   : > { %v358_v3 = vld [vmem:[%s353_s28] sm:$0xff]  ;;  %1008 = vmatpush3.msra.mxu0 %v359_v2  ;;  %1015 = vmatpush3.msra.mxu1 %v444_v5  ;;  %v616_v23 = vld [vmem:[#allocation2 + $0x28] sm:$0xff]  ;;  %v705_v25 = vld [vmem:[#allocation4 + $0x38] sm:$0xff] }
  0x2f   : > { %1010 = vmatmul.mubr.msk.f32.vlgmr.msra.gmra.mxu0 %vm368_vm1, %v358_v3  ;;  %1016 = vmatprep.subr.mxu1 %v1172_v0  ;;  %v963_v16 = vld [vmem:[%s1372_s4] ss:$0 sm:$0xff]  ;;  %v704_v32 = vld [vmem:[#allocation4 + $0x30] sm:$0xff]  ;;  %v703_v33 = vld [vmem:[#allocation4 + $0x28] sm:$0xff] }
  0x30   : > { %1023 = vmatprep.subr.mxu0 %v1172_v0  ;;  %1031 = vmatprep.mubr.msk.f32.mxu0 %vm1173_vm0, %v1172_v0  ;;  %v615_v24 = vld [vmem:[#allocation2 + $0x20] sm:$0xff]  ;;  %v792_v40 = vld [vmem:[%s1375_s7 + $0x18] sm:$0xff]  ;;  %v791_v41 = vld [vmem:[%s1375_s7 + $0x10] sm:$0xff] }
  0x31   : > { %1017 = vmatpush3.msra.mxu1 %v443_v6  ;;  %1024 = vmatpush3.msra.mxu0 %v531_v8  ;;  %v965_v26 = vld [vmem:[%s1374_s6] ss:$0 sm:$0xff]  ;;  %v968_v35 = vld [vmem:[%s1372_s4 + $0x1] ss:$0 sm:$0xff]  ;;  %v790_v42 = vld [vmem:[%s1375_s7 + $0x8] sm:$0xff] }
  0x32   : > { %1018 = vmatprep.subr.mxu1 %v1172_v0  ;;  %1025 = vmatprep.subr.mxu0 %v1172_v0  ;;  %v702_v34 = vld [vmem:[#allocation4 + $0x20] sm:$0xff] }
  0x33   : > { %1019 = vmatpush3.msra.mxu1 %v442_v7  ;;  %1026 = vmatpush3.msra.mxu0 %v530_v13  ;;  %v789_v43 = vld [vmem:[%s1375_s7] sm:$0xff] }
  0x34   : > { %1034 = vmatprep.subr.mxu1 %v1172_v0  ;;  %1027 = vmatprep.subr.mxu0 %v1172_v0  ;;  %v971_v44 = vld [vmem:[%s1374_s6 + $0x1] ss:$0 sm:$0xff]  ;;  %v973_v50 = vld [vmem:[%s1376_s8] ss:$0 sm:$0xff] }
  0x35   : > { %1028 = vmatpush3.msra.mxu0 %v529_v14 }
  0x36   : > { %1029 = vmatprep.subr.mxu0 %v1172_v0 }
  0x37   : > { %1030 = vmatpush3.msra.mxu0 %v528_v15 }
  0x38   : > { %1045 = vmatprep.subr.mxu0 %v1172_v0 }
  0xef   : > { %v438_v10 = vpop.f32.mrf.mxu0 }
  0xf0   : > { %v439_v11 = vadd.f32 %v961_v9, %v438_v10 }
  0xf1   : > { %v1011_v12 = vpop.f32.mrf.mxu0 }
  0xf2   : > { %1021 = vmatmul.mubr.msk.f32.vlgmr.msra.gmra.mxu1 %vm453_vm2, %v439_v11 }
  0xf3   : > { %1042 = vmatprep.mubr.msk.f32.mxu1 %vm1173_vm0, %v1172_v0  ;;  %1035 = vmatpush3.msra.mxu1 %v618_v21 }
  0xf4   : > { %1036 = vmatprep.subr.mxu1 %v1172_v0 }
  0xf5   : > { %1037 = vmatpush3.msra.mxu1 %v617_v22 }
  0xf6   : > { %1038 = vmatprep.subr.mxu1 %v1172_v0 }
  0xf7   : > { %1039 = vmatpush3.msra.mxu1 %v616_v23 }
  0xf8   : > { %1040 = vmatprep.subr.mxu1 %v1172_v0 }
  0xf9   : > { %1041 = vmatpush3.msra.mxu1 %v615_v24 }
  0xfa   : > { %1056 = vmatprep.subr.mxu1 %v1172_v0 }
 0x1b2   : > { %v523_v17 = vpop.f32.mrf.mxu1 }
 0x1b3   : > { %v524_v18 = vadd.f32 %v963_v16, %v523_v17 }
 0x1b4   : > { %v1022_v19 = vpop.f32.mrf.mxu1 }
 0x1b5   : > { %v527_v20 = vmax.f32 %v524_v18, 0.0 }
 0x1b7   : > { %1032 = vmatmul.mubr.msk.f32.vlgmr.msra.gmra.mxu0 %vm453_vm2, %v527_v20 }
 0x1b8   : > { %1053 = vmatprep.mubr.msk.f32.mxu0 %vm1173_vm0, %v1172_v0  ;;  %1046 = vmatpush3.msra.mxu0 %v705_v25 }
 0x1b9   : > { %1047 = vmatprep.subr.mxu0 %v1172_v0 }
 0x1ba   : > { %1048 = vmatpush3.msra.mxu0 %v704_v32 }
 0x1bb   : > { %1049 = vmatprep.subr.mxu0 %v1172_v0 }
 0x1bc   : > { %1050 = vmatpush3.msra.mxu0 %v703_v33 }
 0x1bd   : > { %1051 = vmatprep.subr.mxu0 %v1172_v0 }
 0x1be   : > { %1052 = vmatpush3.msra.mxu0 %v702_v34 }
 0x277   : > { %v608_v27 = vpop.f32.mrf.mxu0 }
 0x278   : > { %v609_v28 = vadd.f32 %v965_v26, %v608_v27 }
 0x279   : > { %v1033_v29 = vpop.f32.mrf.mxu0 }
 0x27a   : > { %v612_v30 = vadd.f32 %v609_v28, %v439_v11 }
 0x27c   : > { %v613_v31 = vmax.f32 %v612_v30, 0.0 }
 0x27e   : > { %1043 = vmatmul.mubr.msk.f32.vlgmr.msra.gmra.mxu1 %vm453_vm2, %v613_v31 }
 0x27f   : > { %1064 = vmatprep.mubr.msk.f32.mxu1 %vm1173_vm0, %v1172_v0  ;;  %1057 = vmatpush3.msra.mxu1 %v792_v40 }
 0x280   : > { %1058 = vmatprep.subr.mxu1 %v1172_v0 }
 0x281   : > { %1059 = vmatpush3.msra.mxu1 %v791_v41 }
 0x282   : > { %1060 = vmatprep.subr.mxu1 %v1172_v0 }
 0x283   : > { %1061 = vmatpush3.msra.mxu1 %v790_v42 }
 0x284   : > { %1062 = vmatprep.subr.mxu1 %v1172_v0 }
 0x285   : > { %1063 = vmatpush3.msra.mxu1 %v789_v43 }
 0x33e   : > { %v696_v36 = vpop.f32.mrf.mxu1 }
 0x33f   : > { %v697_v37 = vadd.f32 %v968_v35, %v696_v36 }
 0x340   : > { %v1044_v38 = vpop.f32.mrf.mxu1 }
 0x341   : > { %v700_v39 = vmax.f32 %v697_v37, 0.0 }
 0x343   : > { %1054 = vmatmul.mubr.msk.f32.vlgmr.msra.gmra.mxu0 %vm453_vm2, %v700_v39 }
 0x403   : > { %v783_v45 = vpop.f32.mrf.mxu0 }
 0x404   : > { %v784_v46 = vadd.f32 %v971_v44, %v783_v45 }
 0x405   : > { %v1055_v47 = vpop.f32.mrf.mxu0 }
 0x406   : > { %v787_v48 = vadd.f32 %v784_v46, %v613_v31 }
 0x408   : > { %v788_v49 = vmax.f32 %v787_v48, 0.0 }
 0x40a   : > { %1065 = vmatmul.mubr.msk.f32.vlgmr.msra.gmra.mxu1 %vm453_vm2, %v788_v49 }
 0x4ca   : > { %v869_v51 = vpop.f32.mrf.mxu1 }
 0x4cb   : > { %v870_v52 = vadd.f32 %v973_v50, %v869_v51 }
 0x4cc   : > { %v1066_v53 = vpop.f32.mrf.mxu1 }
 0x4cd   : > { %874 = vst.msk [vmem:[%s357_s18] sm:$0xff] %vm873_vm3, %v870_v52 }
 0x4ce PF: > { %s21_s30 = sadd.s32 1, %s1166_s30  }
 0x4cf   : > { %p18_p2 = scmp.ge.s32.totalorder %s21_s30, 4  }
 0x4d1   :  { %20 = sbr.rel (!%p18_p2) target bundleno = 2 (0x2), region = 99 }
 0x4d6   :  { %894 = vsyncpa [#allocation3], 1 }
 0x4d7   :  { %896 = vsyncpa [#allocation3 + $0x1], 1 }
 0x4d8   :  { %897 = vsyncpa [#allocation5], 1 }

</bundles_post_ra>
